<compile_context>
chip_gen: v5e
topology: v5e:2x2
jax: 0.10.0
libtpu: 0.0.40
codegen_flags: <defaults>
</compile_context>

<pallas_src>
import functools

import numpy as np
import jax
import jax.numpy as jnp
from jax.experimental import pallas as pl
from jax.experimental.pallas import tpu as pltpu

LANE = 128      # lane width
TR_MAX = 1024   # max sublane rows per grid step (multiple of 32 for int8 tiling)
CHUNKS = 2      # leading "parallel" grid axis -> 2 TensorCores on v7x


def _masked_mse_kernel(out_ref, tgt_ref, mask_ref, sum_ref, cnt_ref, d2_ref,
                       *, n_masks):
    """Per grid step:
      out_ref/tgt_ref : (TR, LANE)            activations
      mask_ref        : (M, TR, LANE) int8    {0,1} masks
      sum_ref/cnt_ref : (M, LANE) f32         accumulators, resident across the
                                              inner ("arbitrary") grid axis
      d2_ref          : (TR, LANE) f32        scratch holding (out - target)^2
    """
    @pl.when(pl.program_id(1) == 0)
    def _():
        sum_ref[...] = jnp.zeros_like(sum_ref)
        cnt_ref[...] = jnp.zeros_like(cnt_ref)

    d = out_ref[...].astype(jnp.float32) - tgt_ref[...].astype(jnp.float32)
    d2_ref[...] = d * d

    # M is small (1 + looped structure channels); static unroll keeps every
    # intermediate at (TR, LANE) instead of (M, TR, LANE).
    for m in range(n_masks):
        mf = mask_ref[m].astype(jnp.float32)               # {0., 1.}
        sum_ref[m:m + 1, :] += jnp.sum(mf * d2_ref[...], axis=0, keepdims=True)
        cnt_ref[m:m + 1, :] += jnp.sum(mf, axis=0, keepdims=True)


def masked_mse_sums(out, target, masks_i8, *, tr_max=TR_MAX, chunks=CHUNKS):
    """masks_i8: (M, total) int8 {0,1}.
    Returns per-mask (sum of squared diff, element count), both f32 of shape (M,)."""
    M, total = masks_i8.shape
    assert int(np.prod(out.shape)) == total
    assert int(np.prod(target.shape)) == total

    rows_min = -(-total // LANE)
    per_chunk = -(-rows_min // chunks)

    # Tile sizing: big (amortize ~0.35 us/step pipeline overhead), multiple of 32
    # rows (int8 sublane tiling), no gross over-padding for tiny inputs, and the
    # double-buffered working set (2 activation streams + M int8 mask streams,
    # plus the d2 scratch) stays under ~12 MiB -> fits v5e's 16 MiB default
    # scoped VMEM and v7x's smaller physical VMEM without raising any limits.
    bytes_per_row = LANE * (2 * (out.dtype.itemsize + target.dtype.itemsize + M) + 4)
    tr_cap = max(32, ((12 * 1024 * 1024) // bytes_per_row // 32) * 32)
    tr = min(tr_max, tr_cap, max(32, -(-per_chunk // 32) * 32))

    rows = -(-rows_min // (tr * chunks)) * (tr * chunks)
    steps = rows // (tr * chunks)
    pad = rows * LANE - total

    def to2d(x):
        flat = x.reshape(-1)
        if pad:
            flat = jnp.pad(flat, (0, pad))
        return flat.reshape(rows, LANE)

    out2d = to2d(out)
    tgt2d = to2d(target)
    m3 = jnp.pad(masks_i8, ((0, 0), (0, pad))) if pad else masks_i8
    m3 = m3.reshape(M, rows, LANE)

    kernel = functools.partial(_masked_mse_kernel, n_masks=M)
    sums, cnts = pl.pallas_call(
        kernel,
        out_shape=(jax.ShapeDtypeStruct((chunks, M, LANE), jnp.float32),
                   jax.ShapeDtypeStruct((chunks, M, LANE), jnp.float32)),
        grid_spec=pltpu.PrefetchScalarGridSpec(
            num_scalar_prefetch=0,
            grid=(chunks, steps),
            in_specs=[
                pl.BlockSpec((tr, LANE), lambda c, t: (c * steps + t, 0)),
                pl.BlockSpec((tr, LANE), lambda c, t: (c * steps + t, 0)),
                pl.BlockSpec((M, tr, LANE), lambda c, t: (0, c * steps + t, 0)),
            ],
            out_specs=[
                pl.BlockSpec((None, M, LANE), lambda c, t: (c, 0, 0)),
                pl.BlockSpec((None, M, LANE), lambda c, t: (c, 0, 0)),
            ],
            scratch_shapes=[pltpu.VMEM((tr, LANE), jnp.float32)],
        ),
        compiler_params=pltpu.CompilerParams(
            dimension_semantics=("parallel", "arbitrary")),
    )(out2d, tgt2d, m3)

    # tiny final reduce over chunk + lane axes (glue)
    return jnp.sum(sums, axis=(0, 2)), jnp.sum(cnts, axis=(0, 2))


def loss_weighted_mse(out, target, possible_mask, CT_structure_mask):
    structure_mask = CT_structure_mask[:, 1:CT_structure_mask.shape[1], :, :, :]
    weight = [0.2, 0.2, 0.1, 0.1, 0.1, 0.1, 0.1, 1.0, 1.0, 1.0]

    # NOTE: loop bound is structure_mask.shape[0] (batch dim), exactly as in the
    # reference PyTorch code, even though indexing is along the channel dim.
    n_loop = structure_mask.shape[0]

    # Mask i of the loop is structure_mask[:, i:i+1, ...]; build all of them with a
    # single transpose+reshape (no per-channel flatten/stack loop) and ship them to
    # the kernel as {0,1} int8 since only mask > 0 is ever used.
    struct_flat = jnp.transpose(structure_mask[:, :n_loop], (1, 0, 2, 3, 4))
    struct_flat = struct_flat.reshape(n_loop, -1)
    masks = jnp.concatenate([possible_mask.reshape(1, -1), struct_flat], axis=0)
    masks_i8 = (masks > 0).astype(jnp.int8)

    sums, cnts = masked_mse_sums(out, target, masks_i8)
    mses = sums / cnts   # nn.MSELoss(reduction='mean') over each selection
    # (empty selection -> 0/0 -> NaN, matching PyTorch's mean over an empty tensor)

    loss = mses[0]
    for i in range(n_loop):
        loss = loss + mses[1 + i] * (weight[i] ** 2)
    return loss


if __name__ == "__main__":
    key = jax.random.PRNGKey(0)
    N, D, H, W = 2, 8, 8, 16      # small 3-D dose volumes, single prediction channel
    C_ct = 11                     # CT structure mask: 1 body channel + 10 structures

    k1, k2, k3, k4 = jax.random.split(key, 4)
    out = jax.random.normal(k1, (N, 1, D, H, W), dtype=jnp.float32)
    target = jax.random.normal(k2, (N, 1, D, H, W), dtype=jnp.float32)
    possible_mask = (jax.random.uniform(k3, (N, 1, D, H, W)) > 0.3).astype(jnp.float32)
    CT_structure_mask = (jax.random.uniform(k4, (N, C_ct, D, H, W)) > 0.5).astype(jnp.float32)

    loss_fn = jax.jit(loss_weighted_mse)
    loss = jax.block_until_ready(loss_fn(out, target, possible_mask, CT_structure_mask))

    # numpy reference (mirrors the PyTorch module exactly)
    o = np.asarray(out); t = np.asarray(target)
    pm = np.asarray(possible_mask)
    sm = np.asarray(CT_structure_mask)[:, 1:]
    w = [0.2, 0.2, 0.1, 0.1, 0.1, 0.1, 0.1, 1, 1, 1]
    ref = np.mean((o[pm > 0] - t[pm > 0]) ** 2)
    for i in range(sm.shape[0]):
        m = sm[:, i:i + 1]
        ref = ref + np.mean((o[m > 0] - t[m > 0]) ** 2) * w[i] ** 2

    assert np.allclose(float(loss), ref, rtol=1e-5, atol=1e-5), (float(loss), float(ref))
    print("KERNEL_OK")
</pallas_src>

<mosaic_0001>
module attributes {stable_mosaic.version = 11 : i64} {
  func.func @_masked_mse_kernel(%arg0: i32, %arg1: i32, %arg2: memref<32x128xf32, #tpu.memory_space<vmem>>, %arg3: memref<32x128xf32, #tpu.memory_space<vmem>>, %arg4: memref<3x32x128xi8, #tpu.memory_space<vmem>>, %arg5: memref<1x3x128xf32, #tpu.memory_space<vmem>>, %arg6: memref<1x3x128xf32, #tpu.memory_space<vmem>>, %arg7: memref<32x128xf32, #tpu.memory_space<vmem>>) attributes {dimension_semantics = [#tpu.dimension_semantics<parallel>, #tpu.dimension_semantics<arbitrary>], iteration_bounds = array<i64: 2, 1>, scalar_prefetch = 0 : i64, scratch_operands = 1 : i64, tpu.core_type = #tpu.core_type<tc>, window_params = [{transform_indices = @transform_0, window_bounds = array<i64: 32, 128>}, {transform_indices = @transform_1, window_bounds = array<i64: 32, 128>}, {transform_indices = @transform_2, window_bounds = array<i64: 3, 32, 128>}, {transform_indices = @transform_3, window_bounds = array<i64: 1, 3, 128>}, {transform_indices = @transform_4, window_bounds = array<i64: 1, 3, 128>}]} {
    %c0_i32 = arith.constant 0 : i32
    %0 = arith.cmpi eq, %arg1, %c0_i32 : i32
    %1 = arith.extui %0 : i1 to i32
    %c0_i32_0 = arith.constant 0 : i32
    %2 = arith.cmpi ne, %1, %c0_i32_0 : i32
    scf.if %2 {
      %cst_60 = arith.constant 0.000000e+00 : f32
      %71 = vector.broadcast %cst_60 : f32 to vector<3x128xf32>
      %c0_61 = arith.constant 0 : index
      %c0_62 = arith.constant 0 : index
      %c0_63 = arith.constant 0 : index
      %72 = vector.load %arg5[%c0_61, %c0_62, %c0_63] : memref<1x3x128xf32, #tpu.memory_space<vmem>>, vector<1x3x128xf32>
      %73 = vector.shape_cast %72 : vector<1x3x128xf32> to vector<3x128xf32>
      %74 = vector.shape_cast %71 : vector<3x128xf32> to vector<1x3x128xf32>
      tpu.vector_store %arg5[%c0_61, %c0_62, %c0_63], %74 {strides = array<i32>} : memref<1x3x128xf32, #tpu.memory_space<vmem>>, vector<1x3x128xf32>,
      %cst_64 = arith.constant 0.000000e+00 : f32
      %75 = vector.broadcast %cst_64 : f32 to vector<3x128xf32>
      %c0_65 = arith.constant 0 : index
      %c0_66 = arith.constant 0 : index
      %c0_67 = arith.constant 0 : index
      %76 = vector.load %arg6[%c0_65, %c0_66, %c0_67] : memref<1x3x128xf32, #tpu.memory_space<vmem>>, vector<1x3x128xf32>
      %77 = vector.shape_cast %76 : vector<1x3x128xf32> to vector<3x128xf32>
      %78 = vector.shape_cast %75 : vector<3x128xf32> to vector<1x3x128xf32>
      tpu.vector_store %arg6[%c0_65, %c0_66, %c0_67], %78 {strides = array<i32>} : memref<1x3x128xf32, #tpu.memory_space<vmem>>, vector<1x3x128xf32>,
    } else {
    }
    %c0 = arith.constant 0 : index
    %c0_1 = arith.constant 0 : index
    %3 = vector.load %arg2[%c0, %c0_1] : memref<32x128xf32, #tpu.memory_space<vmem>>, vector<32x128xf32>
    %c0_2 = arith.constant 0 : index
    %c0_3 = arith.constant 0 : index
    %4 = vector.load %arg3[%c0_2, %c0_3] : memref<32x128xf32, #tpu.memory_space<vmem>>, vector<32x128xf32>
    %5 = arith.subf %3, %4 : vector<32x128xf32>
    %6 = arith.mulf %5, %5 : vector<32x128xf32>
    %c0_4 = arith.constant 0 : index
    %c0_5 = arith.constant 0 : index
    %7 = vector.load %arg7[%c0_4, %c0_5] : memref<32x128xf32, #tpu.memory_space<vmem>>, vector<32x128xf32>
    tpu.vector_store %arg7[%c0_4, %c0_5], %6 {strides = array<i32>} : memref<32x128xf32, #tpu.memory_space<vmem>>, vector<32x128xf32>,
    %c0_6 = arith.constant 0 : index
    %c0_7 = arith.constant 0 : index
    %c0_8 = arith.constant 0 : index
    %8 = vector.load %arg4[%c0_6, %c0_7, %c0_8] : memref<3x32x128xi8, #tpu.memory_space<vmem>>, vector<1x32x128xi8>
    %9 = vector.shape_cast %8 : vector<1x32x128xi8> to vector<32x128xi8>
    %10 = arith.sitofp %9 : vector<32x128xi8> to vector<32x128xf32>
    %c0_9 = arith.constant 0 : index
    %c0_10 = arith.constant 0 : index
    %c0_11 = arith.constant 0 : index
    %11 = vector.load %arg5[%c0_9, %c0_10, %c0_11] : memref<1x3x128xf32, #tpu.memory_space<vmem>>, vector<1x1x128xf32>
    %12 = vector.shape_cast %11 : vector<1x1x128xf32> to vector<1x128xf32>
    %c0_12 = arith.constant 0 : index
    %c0_13 = arith.constant 0 : index
    %13 = vector.load %arg7[%c0_12, %c0_13] : memref<32x128xf32, #tpu.memory_space<vmem>>, vector<32x128xf32>
    %14 = arith.mulf %10, %13 : vector<32x128xf32>
    %cst = arith.constant dense<0.000000e+00> : vector<128xf32>
    %15 = vector.multi_reduction <add>, %14, %cst [0] : vector<32x128xf32> to vector<128xf32>
    %16 = vector.shape_cast %15 : vector<128xf32> to vector<1x128xf32>
    %17 = arith.addf %12, %16 : vector<1x128xf32>
    %c0_14 = arith.constant 0 : index
    %c0_15 = arith.constant 0 : index
    %c0_16 = arith.constant 0 : index
    %18 = vector.load %arg5[%c0_14, %c0_15, %c0_16] : memref<1x3x128xf32, #tpu.memory_space<vmem>>, vector<1x1x128xf32>
    %19 = vector.shape_cast %18 : vector<1x1x128xf32> to vector<1x128xf32>
    %20 = vector.shape_cast %17 : vector<1x128xf32> to vector<1x1x128xf32>
    tpu.vector_store %arg5[%c0_14, %c0_15, %c0_16], %20 {strides = array<i32>} : memref<1x3x128xf32, #tpu.memory_space<vmem>>, vector<1x1x128xf32>,
    %c0_17 = arith.constant 0 : index
    %c0_18 = arith.constant 0 : index
    %c0_19 = arith.constant 0 : index
    %21 = vector.load %arg6[%c0_17, %c0_18, %c0_19] : memref<1x3x128xf32, #tpu.memory_space<vmem>>, vector<1x1x128xf32>
    %22 = vector.shape_cast %21 : vector<1x1x128xf32> to vector<1x128xf32>
    %cst_20 = arith.constant dense<0.000000e+00> : vector<128xf32>
    %23 = vector.multi_reduction <add>, %10, %cst_20 [0] : vector<32x128xf32> to vector<128xf32>
    %24 = vector.shape_cast %23 : vector<128xf32> to vector<1x128xf32>
    %25 = arith.addf %22, %24 : vector<1x128xf32>
    %c0_21 = arith.constant 0 : index
    %c0_22 = arith.constant 0 : index
    %c0_23 = arith.constant 0 : index
    %26 = vector.load %arg6[%c0_21, %c0_22, %c0_23] : memref<1x3x128xf32, #tpu.memory_space<vmem>>, vector<1x1x128xf32>
    %27 = vector.shape_cast %26 : vector<1x1x128xf32> to vector<1x128xf32>
    %28 = vector.shape_cast %25 : vector<1x128xf32> to vector<1x1x128xf32>
    tpu.vector_store %arg6[%c0_21, %c0_22, %c0_23], %28 {strides = array<i32>} : memref<1x3x128xf32, #tpu.memory_space<vmem>>, vector<1x1x128xf32>,
    %c1 = arith.constant 1 : index
    %c0_24 = arith.constant 0 : index
    %c0_25 = arith.constant 0 : index
    %29 = vector.load %arg4[%c1, %c0_24, %c0_25] : memref<3x32x128xi8, #tpu.memory_space<vmem>>, vector<1x32x128xi8>
    %30 = vector.shape_cast %29 : vector<1x32x128xi8> to vector<32x128xi8>
    %31 = arith.sitofp %30 : vector<32x128xi8> to vector<32x128xf32>
    %c0_26 = arith.constant 0 : index
    %c1_27 = arith.constant 1 : index
    %c0_28 = arith.constant 0 : index
    %32 = vector.load %arg5[%c0_26, %c1_27, %c0_28] : memref<1x3x128xf32, #tpu.memory_space<vmem>>, vector<1x1x128xf32>
    %33 = vector.shape_cast %32 : vector<1x1x128xf32> to vector<1x128xf32>
    %c0_29 = arith.constant 0 : index
    %c0_30 = arith.constant 0 : index
    %34 = vector.load %arg7[%c0_29, %c0_30] : memref<32x128xf32, #tpu.memory_space<vmem>>, vector<32x128xf32>
    %35 = arith.mulf %31, %34 : vector<32x128xf32>
    %cst_31 = arith.constant dense<0.000000e+00> : vector<128xf32>
    %36 = vector.multi_reduction <add>, %35, %cst_31 [0] : vector<32x128xf32> to vector<128xf32>
    %37 = vector.shape_cast %36 : vector<128xf32> to vector<1x128xf32>
    %38 = arith.addf %33, %37 : vector<1x128xf32>
    %c0_32 = arith.constant 0 : index
    %c1_33 = arith.constant 1 : index
    %c0_34 = arith.constant 0 : index
    %39 = vector.load %arg5[%c0_32, %c1_33, %c0_34] : memref<1x3x128xf32, #tpu.memory_space<vmem>>, vector<1x1x128xf32>
    %40 = vector.shape_cast %39 : vector<1x1x128xf32> to vector<1x128xf32>
    %41 = vector.shape_cast %38 : vector<1x128xf32> to vector<1x1x128xf32>
    tpu.vector_store %arg5[%c0_32, %c1_33, %c0_34], %41 {strides = array<i32>} : memref<1x3x128xf32, #tpu.memory_space<vmem>>, vector<1x1x128xf32>,
    %c0_35 = arith.constant 0 : index
    %c1_36 = arith.constant 1 : index
    %c0_37 = arith.constant 0 : index
    %42 = vector.load %arg6[%c0_35, %c1_36, %c0_37] : memref<1x3x128xf32, #tpu.memory_space<vmem>>, vector<1x1x128xf32>
    %43 = vector.shape_cast %42 : vector<1x1x128xf32> to vector<1x128xf32>
    %cst_38 = arith.constant dense<0.000000e+00> : vector<128xf32>
    %44 = vector.multi_reduction <add>, %31, %cst_38 [0] : vector<32x128xf32> to vector<128xf32>
    %45 = vector.shape_cast %44 : vector<128xf32> to vector<1x128xf32>
    %46 = arith.addf %43, %45 : vector<1x128xf32>
    %c0_39 = arith.constant 0 : index
    %c1_40 = arith.constant 1 : index
    %c0_41 = arith.constant 0 : index
    %47 = vector.load %arg6[%c0_39, %c1_40, %c0_41] : memref<1x3x128xf32, #tpu.memory_space<vmem>>, vector<1x1x128xf32>
    %48 = vector.shape_cast %47 : vector<1x1x128xf32> to vector<1x128xf32>
    %49 = vector.shape_cast %46 : vector<1x128xf32> to vector<1x1x128xf32>
    tpu.vector_store %arg6[%c0_39, %c1_40, %c0_41], %49 {strides = array<i32>} : memref<1x3x128xf32, #tpu.memory_space<vmem>>, vector<1x1x128xf32>,
    %c2 = arith.constant 2 : index
    %c0_42 = arith.constant 0 : index
    %c0_43 = arith.constant 0 : index
    %50 = vector.load %arg4[%c2, %c0_42, %c0_43] : memref<3x32x128xi8, #tpu.memory_space<vmem>>, vector<1x32x128xi8>
    %51 = vector.shape_cast %50 : vector<1x32x128xi8> to vector<32x128xi8>
    %52 = arith.sitofp %51 : vector<32x128xi8> to vector<32x128xf32>
    %c0_44 = arith.constant 0 : index
    %c2_45 = arith.constant 2 : index
    %c0_46 = arith.constant 0 : index
    %53 = vector.load %arg5[%c0_44, %c2_45, %c0_46] : memref<1x3x128xf32, #tpu.memory_space<vmem>>, vector<1x1x128xf32>
    %54 = vector.shape_cast %53 : vector<1x1x128xf32> to vector<1x128xf32>
    %c0_47 = arith.constant 0 : index
    %c0_48 = arith.constant 0 : index
    %55 = vector.load %arg7[%c0_47, %c0_48] : memref<32x128xf32, #tpu.memory_space<vmem>>, vector<32x128xf32>
    %56 = arith.mulf %52, %55 : vector<32x128xf32>
    %cst_49 = arith.constant dense<0.000000e+00> : vector<128xf32>
    %57 = vector.multi_reduction <add>, %56, %cst_49 [0] : vector<32x128xf32> to vector<128xf32>
    %58 = vector.shape_cast %57 : vector<128xf32> to vector<1x128xf32>
    %59 = arith.addf %54, %58 : vector<1x128xf32>
    %c0_50 = arith.constant 0 : index
    %c2_51 = arith.constant 2 : index
    %c0_52 = arith.constant 0 : index
    %60 = vector.load %arg5[%c0_50, %c2_51, %c0_52] : memref<1x3x128xf32, #tpu.memory_space<vmem>>, vector<1x1x128xf32>
    %61 = vector.shape_cast %60 : vector<1x1x128xf32> to vector<1x128xf32>
    %62 = vector.shape_cast %59 : vector<1x128xf32> to vector<1x1x128xf32>
    tpu.vector_store %arg5[%c0_50, %c2_51, %c0_52], %62 {strides = array<i32>} : memref<1x3x128xf32, #tpu.memory_space<vmem>>, vector<1x1x128xf32>,
    %c0_53 = arith.constant 0 : index
    %c2_54 = arith.constant 2 : index
    %c0_55 = arith.constant 0 : index
    %63 = vector.load %arg6[%c0_53, %c2_54, %c0_55] : memref<1x3x128xf32, #tpu.memory_space<vmem>>, vector<1x1x128xf32>
    %64 = vector.shape_cast %63 : vector<1x1x128xf32> to vector<1x128xf32>
    %cst_56 = arith.constant dense<0.000000e+00> : vector<128xf32>
    %65 = vector.multi_reduction <add>, %52, %cst_56 [0] : vector<32x128xf32> to vector<128xf32>
    %66 = vector.shape_cast %65 : vector<128xf32> to vector<1x128xf32>
    %67 = arith.addf %64, %66 : vector<1x128xf32>
    %c0_57 = arith.constant 0 : index
    %c2_58 = arith.constant 2 : index
    %c0_59 = arith.constant 0 : index
    %68 = vector.load %arg6[%c0_57, %c2_58, %c0_59] : memref<1x3x128xf32, #tpu.memory_space<vmem>>, vector<1x1x128xf32>
    %69 = vector.shape_cast %68 : vector<1x1x128xf32> to vector<1x128xf32>
    %70 = vector.shape_cast %67 : vector<1x128xf32> to vector<1x1x128xf32>
    tpu.vector_store %arg6[%c0_57, %c2_58, %c0_59], %70 {strides = array<i32>} : memref<1x3x128xf32, #tpu.memory_space<vmem>>, vector<1x1x128xf32>,
    return
  }
  func.func @transform_0(%arg0: i32, %arg1: i32) -> (i32, i32) {
    %c1_i32 = arith.constant 1 : i32
    %0 = arith.muli %arg0, %c1_i32 : i32
    %1 = arith.addi %0, %arg1 : i32
    %c0_i32 = arith.constant 0 : i32
    %c0_i32_0 = arith.constant 0 : i32
    return %1, %c0_i32 : i32, i32
  }
  func.func @transform_1(%arg0: i32, %arg1: i32) -> (i32, i32) {
    %c1_i32 = arith.constant 1 : i32
    %0 = arith.muli %arg0, %c1_i32 : i32
    %1 = arith.addi %0, %arg1 : i32
    %c0_i32 = arith.constant 0 : i32
    %c0_i32_0 = arith.constant 0 : i32
    return %1, %c0_i32 : i32, i32
  }
  func.func @transform_2(%arg0: i32, %arg1: i32) -> (i32, i32, i32) {
    %c1_i32 = arith.constant 1 : i32
    %0 = arith.muli %arg0, %c1_i32 : i32
    %1 = arith.addi %0, %arg1 : i32
    %c0_i32 = arith.constant 0 : i32
    %c0_i32_0 = arith.constant 0 : i32
    %c0_i32_1 = arith.constant 0 : i32
    return %c0_i32, %1, %c0_i32_0 : i32, i32, i32
  }
  func.func @transform_3(%arg0: i32, %arg1: i32) -> (i32, i32, i32) {
    %c0_i32 = arith.constant 0 : i32
    %c0_i32_0 = arith.constant 0 : i32
    %c0_i32_1 = arith.constant 0 : i32
    return %arg0, %c0_i32, %c0_i32_0 : i32, i32, i32
  }
  func.func @transform_4(%arg0: i32, %arg1: i32) -> (i32, i32, i32) {
    %c0_i32 = arith.constant 0 : i32
    %c0_i32_0 = arith.constant 0 : i32
    %c0_i32_1 = arith.constant 0 : i32
    return %arg0, %c0_i32, %c0_i32_0 : i32, i32, i32
  }
}

</mosaic_0001>

<bundles_post_ra>
// kernel: div.1
= control target key start
LH: loop header
LB: loop body
LE: loop exit
PB: predicated region body
PF: predicated region fallthrough
CT: control target
= control target key end

     0   :  { %s50_s0 = inlined_call_operand.vmem [shape: f32[3], index: 0, kind: input, shape index: {}]   ;;  %s51_s1 = inlined_call_operand.vmem [shape: f32[3], index: 1, kind: input, shape index: {}]   ;;  %s52_s2 = inlined_call_operand.vmem [shape: f32[3], index: 2, kind: output, shape index: {}]  }
   0x1   :  { %v4_v0 = vld [vmem:[%s51_s1] sm:$0x1] }
   0x2   :  { %24 = vrcp.f32 %v4_v0  ;;  %v18_v3 = vand.u32 2147483648, %v4_v0  ;;  %vm12_vm0 = vweird.f32 %v4_v0  ;;  %v16_v5 = vand.u32 2147483647, %v4_v0  ;;  %v3_v9 = vld [vmem:[%s50_s0] sm:$0x1] }
   0x4   :  { %v19_v7 = vor.u32 1.1754944e-38, %v18_v3  ;;  %vm17_vm3 = vcmp.eq.f32.partialorder %v16_v5, 8.507059e+37 }
   0x8   :  { %v25_v1 = vpop.eup %24 }
   0x9   :  { %v8_v2 = vmul.f32 %v25_v1, %v4_v0  ;;  %vm13_vm1 = vweird.f32 %v25_v1 }
   0xa   :  { %vm14_vm2 = vmor %vm12_vm0, %vm13_vm1 }
   0xb   :  { %v9_v4 = vsub.f32 1.0, %v8_v2 }
   0xd   :  { %v10_v6 = vmul.f32 %v25_v1, %v9_v4 }
   0xf   :  { %v11_v8 = vadd.f32 %v25_v1, %v10_v6 }
  0x11   :  { %v15_v10 = vsel %vm14_vm2, %v25_v1, %v11_v8 }
  0x12   :  { %v20_v11 = vsel %vm17_vm3, %v19_v7, %v15_v10 }
  0x13   :  { %v21_v12 = vmul.f32 %v20_v11, %v3_v9 }
  0x15   :  { %23 = vst [vmem:[%s52_s2] sm:$0x1] %v21_v12 }

// kernel: loss_weighted_mse.1
= control target key start
LH: loop header
LB: loop body
LE: loop exit
PB: predicated region body
PF: predicated region fallthrough
CT: control target
= control target key end

     0   :  { %s723_s15 = smov 0   ;;  %s725_s16 = smov 0   ;;  %s817_s0 = inlined_call_operand.vmem [shape: f32[64,128], index: 0, kind: input, shape index: {}]   ;;  %s818_s1 = inlined_call_operand.vmem [shape: f32[64,128], index: 1, kind: input, shape index: {}]   ;;  %s819_s2 = inlined_call_operand.vmem [shape: s8[3,64,128], index: 2, kind: input, shape index: {}]   ;;  %s820_s3 = inlined_call_operand.vmem [shape: f32[2,3,128], index: 3, kind: output, shape index: {0}]   ;;  %s821_s4 = inlined_call_operand.vmem [shape: f32[2,3,128], index: 4, kind: output, shape index: {1}]  }
   0x1   :  { %s727_s17 = smov 0   ;;  %s729_s18 = smov 0  }
   0x2   :  { %s731_s19 = smov 0  }
   0x3 LB: > { %s27_s20 = sadd.s32 1, %s691_s18  ;;  %p99_p1 = scmp.ne.s32.totalorder %s683_s16, %s679_s15  ;;  %s695_s19 = sphi %s731_s19, %s15_s19   ;;  %s691_s18 = sphi %s729_s18, %s825_s18   ;;  %s687_s17 = sphi %s727_s17, %s824_s17   ;;  %s683_s16 = sphi %s725_s16, %s823_s16   ;;  %s679_s15 = sphi %s723_s15, %s822_s15  }
   0x4   : > { %p29_p0 = scmp.ge.s32.totalorder %s27_s20, 2  ;;  %p100_p2 = scmp.eq.s32.totalorder %s695_s19, 0 }
   0x5   : > { %s92_s22 = sadd.s32 1, %s683_s16  ;;  %p601_p5 = scmp.ge.s32.totalorder %s695_s19, 2 }
   0x6   : > { %s827_s20 = smov (%p29_p0, %s27_s20), 0  ;;  %p101_p3 = por %p100_p2, %p99_p1 }
   0x7   : > { %s89_s21 = ssub.s32 %s691_s18, %s827_s20  ;;  %177 = sbr.rel (%p601_p5) target bundleno = 19 (0x13), region = 16 }
   0x8   : > { %p90_p4 = scmp.eq.s32.totalorder %s89_s21, 0 }
   0xa   : > { %s758_s23 = scalar_select %p90_p4, %s683_s16, %s92_s22  }
   0xc   : > { %202 = sbr.rel (!%p101_p3) target bundleno = 19 (0x13), region = 28  ;;  %s204_s24 = sand.u32 (%p101_p3), 1, %s683_s16  }
   0xd   : > { %s602_s25 = sshll.u32 (%p101_p3), %s691_s18, 3  ;;  %s614_s26 = smul.u32 (%p101_p3), 24, %s204_s24 }
   0xe   : > { %s209_s29 = scalar_lea.vmem (%p101_p3), %s819_s2, %s602_s25 }
   0xf   : > { %v242_v0 = vld [vmem:[%s209_s29] sm:$0xff] (%p101_p3)  ;;  %v244_v1 = vld [vmem:[%s209_s29 + $0x10] sm:$0xff] (%p101_p3)  ;;  %s206_s30 = scalar_lea.vmem (%p101_p3), [#allocation3], %s614_s26 }
  0x10   : > { %v246_v2 = vld [vmem:[%s209_s29 + $0x20] sm:$0xff] (%p101_p3)  ;;  %243 = vst [vmem:[%s206_s30] sm:$0xff] (%p101_p3), %v242_v0 }
  0x11   : > { %245 = vst [vmem:[%s206_s30 + $0x8] sm:$0xff] %v244_v1 }
  0x12   : > { %247 = vst [vmem:[%s206_s30 + $0x10] sm:$0xff] %v246_v2 }
  0x13 PF: > { %p603_p6 = scmp.ge.s32.totalorder %s695_s19, 1  ;;  %p252_p7 = scmp.lt.s32.totalorder %s695_s19, 3 }
  0x15   : > { %p253_p8 = pnand %p603_p6, %p252_p7 }
  0x16   : > { %p316_p9 = scmp.lt.s32.totalorder (!%p253_p8), %s687_s17, 1  ;;  %s259_s5 = sand.u32 (!%p253_p8), 1, %s679_s15  }
  0x17   : > { %256 = sbr.rel (%p253_p8) target bundleno = 65 (0x41), region = 66  ;;  %s604_s7 = sshll.u32 (!%p253_p8), %s687_s17, 2 }
  0x18   : > { %s615_s6 = smul.u32 (!%p253_p8), 24, %s259_s5  ;;  %p301_p10 = scmp.lt.s32.totalorder (!%p253_p8), %s604_s7, 7 }
  0x1a   : > { %s261_s9 = scalar_lea.vmem (!%p253_p8), [#allocation3], %s615_s6 }
  0x1c   : > { %s829_s17 = smov (!%p316_p9, %s687_s17), 1  ;;  %v350_v3 = vld [vmem:[%s261_s9] sm:$0xff]  ;;  %v610_v4 = vld [vmem:[%s261_s9 + $0x8] sm:$0xff]  ;;  %v697_v8 = vmov 0.0   ;;  %s831_s7 = smov (!%p301_p10, %s604_s7), 7  ;;  %v611_v13 = vld [vmem:[%s261_s9 + $0x10] sm:$0xff] }
  0x1d   : > { %s608_s8 = sshll.u32 %s829_s17, 2  ;;  %v351_v5 = vunpack.c.0.s8 %v350_v3  ;;  %v352_v6 = vunpack.c.1.s8 %v350_v3  ;;  %v353_v7 = vunpack.c.2.s8 %v350_v3  ;;  %v354_v9 = vunpack.c.3.s8 %v350_v3  ;;  %s605_s15 = sshll.u32 %s831_s7, 3 }
  0x1e   : > { %s775_s12 = scalar_lea.vmem %s820_s3, %s608_s8  ;;  %s780_s21 = scalar_lea.vmem %s821_s4, %s608_s8  ;;  %v393_v10 = vunpack.c.0.s8 %v610_v4  ;;  %v394_v11 = vunpack.c.1.s8 %v610_v4  ;;  %v395_v12 = vunpack.c.2.s8 %v610_v4  ;;  %v396_v16 = vunpack.c.3.s8 %v610_v4 }
  0x1f   : > { %328 = vst [vmem:[%s775_s12] sm:$0x7] %v697_v8  ;;  %v355_v14 = vcvt.s32.f32 %v351_v5  ;;  %v356_v15 = vcvt.s32.f32 %v352_v6  ;;  %v357_v17 = vcvt.s32.f32 %v353_v7  ;;  %s304_s24 = scalar_lea.vmem %s817_s0, %s605_s15  ;;  %s312_s27 = scalar_lea.vmem %s818_s1, %s605_s15  ;;  %v435_v21 = vunpack.c.0.s8 %v611_v13 }
  0x20   : > { %329 = vst [vmem:[%s780_s21] sm:$0x7] %v697_v8  ;;  %v397_v18 = vcvt.s32.f32 %v393_v10  ;;  %v398_v19 = vcvt.s32.f32 %v394_v11  ;;  %v436_v22 = vunpack.c.1.s8 %v611_v13  ;;  %v437_v23 = vunpack.c.2.s8 %v611_v13  ;;  %v330_v24 = vld [vmem:[%s304_s24] sm:$0xff]  ;;  %v331_v25 = vld [vmem:[%s304_s24 + $0x8] sm:$0xff]  ;;  %v332_v26 = vld [vmem:[%s304_s24 + $0x10] sm:$0xff] }
  0x21   : > { %v380_v20 = vadd.f32 %v356_v15, %v355_v14  ;;  %v358_v27 = vcvt.s32.f32 %v354_v9  ;;  %v399_v28 = vcvt.s32.f32 %v395_v12  ;;  %v438_v30 = vunpack.c.3.s8 %v611_v13  ;;  %v333_v31 = vld [vmem:[%s304_s24 + $0x18] sm:$0xff]  ;;  %v334_v32 = vld [vmem:[%s312_s27] sm:$0xff]  ;;  %v335_v33 = vld [vmem:[%s312_s27 + $0x8] sm:$0xff] }
  0x22   : > { %v422_v29 = vadd.f32 %v398_v19, %v397_v18  ;;  %v400_v35 = vcvt.s32.f32 %v396_v16  ;;  %v439_v36 = vcvt.s32.f32 %v435_v21  ;;  %v440_v37 = vcvt.s32.f32 %v436_v22  ;;  %v336_v38 = vld [vmem:[%s312_s27 + $0x10] sm:$0xff]  ;;  %v337_v39 = vld [vmem:[%s312_s27 + $0x18] sm:$0xff] }
  0x23   : > { %v381_v34 = vadd.f32 %v380_v20, %v357_v17  ;;  %v338_v40 = vsub.f32 %v330_v24, %v334_v32  ;;  %v339_v41 = vsub.f32 %v331_v25, %v335_v33  ;;  %v441_v43 = vcvt.s32.f32 %v437_v23 }
  0x24   : > { %v423_v42 = vadd.f32 %v422_v29, %v399_v28  ;;  %v340_v44 = vsub.f32 %v332_v26, %v336_v38  ;;  %v341_v45 = vsub.f32 %v333_v31, %v337_v39  ;;  %v464_v47 = vadd.f32 %v440_v37, %v439_v36 }
  0x25   : > { %v382_v46 = vadd.f32 %v381_v34, %v358_v27  ;;  %v342_v48 = vmul.f32 %v338_v40, %v338_v40  ;;  %v343_v49 = vmul.f32 %v339_v41, %v339_v41  ;;  %v442_v51 = vcvt.s32.f32 %v438_v30 }
  0x26   : > { %v424_v50 = vadd.f32 %v423_v42, %v400_v35  ;;  %v344_v52 = vmul.f32 %v340_v44, %v340_v44  ;;  %v345_v53 = vmul.f32 %v341_v45, %v341_v45  ;;  %v465_v55 = vadd.f32 %v464_v47, %v441_v43 }
  0x27   : > { %v383_v54 = vrot.slane %v382_v46, 4  ;;  %v364_v56 = vmul.f32 %v355_v14, %v342_v48  ;;  %v365_v57 = vmul.f32 %v356_v15, %v343_v49  ;;  %v406_v58 = vmul.f32 %v397_v18, %v342_v48  ;;  %v379_v22 = vld [vmem:[%s780_s21] sm:$0x1]  ;;  %v421_v32 = vld [vmem:[%s780_s21 + $0x1] sm:$0x1] }
  0x28   : > { %v407_v59 = vmul.f32 %v398_v19, %v343_v49  ;;  %v366_v60 = vmul.f32 %v357_v17, %v344_v52  ;;  %v367_v61 = vmul.f32 %v358_v27, %v345_v53  ;;  %v408_v63 = vmul.f32 %v399_v28, %v344_v52  ;;  %v463_v47 = vld [vmem:[%s780_s21 + $0x2] sm:$0x1] }
  0x29   : > { %v384_v62 = vadd.f32 %v383_v54, %v382_v46  ;;  %v368_v0 = vadd.f32 %v365_v57, %v364_v56  ;;  %v409_v1 = vmul.f32 %v400_v35, %v345_v53  ;;  %v425_v3 = vrot.slane %v424_v50, 4 }
  0x2a   : > { %v410_v2 = vadd.f32 %v407_v59, %v406_v58  ;;  %v448_v5 = vmul.f32 %v439_v36, %v342_v48  ;;  %v449_v6 = vmul.f32 %v440_v37, %v343_v49  ;;  %v450_v7 = vmul.f32 %v441_v43, %v344_v52  ;;  %v359_v48 = vld [vmem:[%s775_s12] sm:$0x1]  ;;  %v401_v49 = vld [vmem:[%s775_s12 + $0x1] sm:$0x1]  ;;  %v443_v58 = vld [vmem:[%s775_s12 + $0x2] sm:$0x1] }
  0x2b   : > { %v385_v4 = vrot.slane %v384_v62, 2  ;;  %v369_v8 = vadd.f32 %v368_v0, %v366_v60  ;;  %v426_v10 = vadd.f32 %v425_v3, %v424_v50  ;;  %v451_v12 = vmul.f32 %v442_v51, %v345_v53 }
  0x2c   : > { %v411_v9 = vadd.f32 %v410_v2, %v408_v63  ;;  %v452_v13 = vadd.f32 %v449_v6, %v448_v5  ;;  %v466_v14 = vadd.f32 %v465_v55, %v442_v51 }
  0x2d   : > { %v386_v11 = vadd.f32 %v385_v4, %v384_v62  ;;  %v370_v15 = vadd.f32 %v369_v8, %v367_v61  ;;  %v427_v17 = vrot.slane %v426_v10, 2 }
  0x2e   : > { %v412_v16 = vadd.f32 %v411_v9, %v409_v1  ;;  %v453_v19 = vadd.f32 %v452_v13, %v450_v7  ;;  %v467_v20 = vrot.slane %v466_v14, 4 }
  0x2f   : > { %v387_v18 = vrot.slane %v386_v11, 1  ;;  %v371_v21 = vrot.slane %v370_v15, 4  ;;  %v428_v24 = vadd.f32 %v427_v17, %v426_v10 }
  0x30   : > { %v413_v23 = vrot.slane %v412_v16, 4  ;;  %v454_v26 = vadd.f32 %v453_v19, %v451_v12  ;;  %v468_v27 = vadd.f32 %v467_v20, %v466_v14 }
  0x31   : > { %v388_v25 = vadd.f32 %v387_v18, %v386_v11  ;;  %v372_v28 = vadd.f32 %v371_v21, %v370_v15  ;;  %v429_v30 = vrot.slane %v428_v24, 1 }
  0x32   : > { %v414_v29 = vadd.f32 %v413_v23, %v412_v16  ;;  %v455_v33 = vrot.slane %v454_v26, 4  ;;  %v469_v34 = vrot.slane %v468_v27, 2 }
  0x33   : > { %v389_v31 = vadd.f32 %v388_v25, %v379_v22  ;;  %v373_v35 = vrot.slane %v372_v28, 2  ;;  %v430_v37 = vadd.f32 %v429_v30, %v428_v24 }
  0x34   : > { %v415_v36 = vrot.slane %v414_v29, 2  ;;  %v456_v38 = vadd.f32 %v455_v33, %v454_v26  ;;  %v470_v39 = vadd.f32 %v469_v34, %v468_v27 }
  0x35   : > { %390 = vst [vmem:[%s780_s21] sm:$0x1] %v389_v31  ;;  %v374_v40 = vadd.f32 %v373_v35, %v372_v28  ;;  %v431_v42 = vadd.f32 %v430_v37, %v421_v32 }
  0x36   : > { %v416_v41 = vadd.f32 %v415_v36, %v414_v29  ;;  %v457_v43 = vrot.slane %v456_v38, 2  ;;  %v471_v44 = vrot.slane %v470_v39, 1 }
  0x37   : > { %v375_v45 = vrot.slane %v374_v40, 1  ;;  %432 = vst [vmem:[%s780_s21 + $0x1] sm:$0x1] %v431_v42 }
  0x38   : > { %v417_v46 = vrot.slane %v416_v41, 1  ;;  %v458_v50 = vadd.f32 %v457_v43, %v456_v38  ;;  %v472_v51 = vadd.f32 %v471_v44, %v470_v39 }
  0x39   : > { %v376_v52 = vadd.f32 %v375_v45, %v374_v40 }
  0x3a   : > { %v418_v53 = vadd.f32 %v417_v46, %v416_v41  ;;  %v459_v54 = vrot.slane %v458_v50, 1  ;;  %v473_v55 = vadd.f32 %v472_v51, %v463_v47 }
  0x3b   : > { %v377_v56 = vadd.f32 %v376_v52, %v359_v48 }
  0x3c   : > { %v419_v57 = vadd.f32 %v418_v53, %v401_v49  ;;  %v460_v59 = vadd.f32 %v459_v54, %v458_v50  ;;  %474 = vst [vmem:[%s780_s21 + $0x2] sm:$0x1] %v473_v55 }
  0x3d   : > { %378 = vst [vmem:[%s775_s12] sm:$0x1] %v377_v56 }
  0x3e   : > { %420 = vst [vmem:[%s775_s12 + $0x1] sm:$0x1] %v419_v57  ;;  %v461_v60 = vadd.f32 %v460_v59, %v443_v58 }
  0x40   : > { %462 = vst [vmem:[%s775_s12 + $0x2] sm:$0x1] %v461_v60 }
  0x41 PF: > { %s15_s19 = sadd.s32 1, %s695_s19   ;;  %s822_s15 = smov %s683_s16 }
  0x42   : > { %p12_p11 = scmp.ge.s32.totalorder %s15_s19, 4   ;;  %s823_s16 = smov %s758_s23 }
  0x43   : > { %s824_s17 = smov %s691_s18  ;;  %s825_s18 = smov %s827_s20 }
  0x44   :  { %14 = sbr.rel (!%p12_p11) target bundleno = 3 (0x3), region = 129 }

</bundles_post_ra>
